<compile_context>
chip_gen: v6e
topology: v6e:2x2x1
jax: 0.10.0
libtpu: 0.0.40
codegen_flags: <defaults>
</compile_context>

<pallas_src>
import functools

import jax
import jax.numpy as jnp
from jax import lax
from jax.experimental import pallas as pl
from jax.experimental.pallas import tpu as pltpu


# ---------------------------------------------------------------------------
# Fused kernel: softmax(PQ) + entropy + node pooling + GLU, one invocation.
# ---------------------------------------------------------------------------
def _diff_pool_kernel(p_ref, q_ref, x_ref, w1_ref, b1_ref, w2_ref, b2_ref,
                      y_ref, s_ref, ent_ref, xp_ref, *, BT, N):
    # ---- s = softmax(P @ Q, axis=-1) ----------------------------------
    logits = jnp.dot(p_ref[...], q_ref[...],
                     preferred_element_type=jnp.float32)              # (M, N)
    mx = jnp.max(logits, axis=-1, keepdims=True)
    e = jnp.exp(logits - mx)
    s = e / jnp.sum(e, axis=-1, keepdims=True)
    s_ref[...] = s

    # ---- ent_loss = mean_m sum_n -s * log(s + 1e-15) -------------------
    ent_rows = jnp.sum(-s * jnp.log(s + 1e-15), axis=-1, keepdims=True)  # (M,1)
    ent_ref[...] = jnp.mean(ent_rows, axis=0, keepdims=True)             # (1,1)

    # ---- pooling: xp[bt*N + n, c] = sum_m s[m, n] * x[bt, m, c] ---------
    # All BT slabs are VMEM-resident; unroll the per-slab MXU contraction and
    # assemble the pooled rows at static offsets in a (BT*N, C) scratch so the
    # GLU below is a single matmul pair and a single store.
    for bt in range(BT):
        xp_bt = lax.dot_general(s, x_ref[bt], (((0,), (0,)), ((), ())),
                                preferred_element_type=jnp.float32)   # (N, C)
        xp_ref[bt * N:(bt + 1) * N, :] = xp_bt

    # ---- GLU over the channel axis: ONE matmul pair, one sigmoid, one store
    xp = xp_ref[...]                                                  # (BT*N, C)
    y1 = jnp.dot(xp, w1_ref[...],
                 preferred_element_type=jnp.float32) + b1_ref[...]
    y2 = jnp.dot(xp, w2_ref[...],
                 preferred_element_type=jnp.float32) + b2_ref[...]
    y_ref[...] = y1 * jax.nn.sigmoid(y2)


# ---------------------------------------------------------------------------
# Wrapper
# ---------------------------------------------------------------------------
@jax.jit
def diff_pool_forward(x, P, Q, w1, b1, w2, b2):
    B, T, M, C = x.shape
    R = P.shape[1]
    N = Q.shape[1]
    BT = B * T

    x_flat = x.reshape(BT, M, C)          # free reshape (no transpose/copy)

    kernel = functools.partial(_diff_pool_kernel, BT=BT, N=N)

    y_flat, s, ent = pl.pallas_call(
        kernel,
        out_shape=(jax.ShapeDtypeStruct((BT * N, C), jnp.float32),   # y
                   jax.ShapeDtypeStruct((M, N), jnp.float32),        # s
                   jax.ShapeDtypeStruct((1, 1), jnp.float32)),       # ent
        grid=(1,),
        in_specs=[
            pl.BlockSpec((M, R), lambda i: (0, 0)),          # P
            pl.BlockSpec((R, N), lambda i: (0, 0)),          # Q
            pl.BlockSpec((BT, M, C), lambda i: (0, 0, 0)),   # x (all slabs)
            pl.BlockSpec((C, C), lambda i: (0, 0)),          # W1
            pl.BlockSpec((1, C), lambda i: (0, 0)),          # b1
            pl.BlockSpec((C, C), lambda i: (0, 0)),          # W2
            pl.BlockSpec((1, C), lambda i: (0, 0)),          # b2
        ],
        out_specs=(
            pl.BlockSpec((BT * N, C), lambda i: (0, 0)),     # y
            pl.BlockSpec((M, N), lambda i: (0, 0)),          # s
            pl.BlockSpec((1, 1), lambda i: (0, 0)),          # ent
        ),
        scratch_shapes=[pltpu.VMEM((BT * N, C), jnp.float32)],
        compiler_params=pltpu.CompilerParams(
            dimension_semantics=("arbitrary",)),
    )(P, Q, x_flat, w1, b1, w2, b2)

    return y_flat.reshape(B, T, N, C), s, ent[0, 0]


# ---------------------------------------------------------------------------
# Pure-JAX reference (for correctness check)
# ---------------------------------------------------------------------------
def diff_pool_reference(x, P, Q, w1, b1, w2, b2):
    s = jax.nn.softmax(P @ Q, axis=-1)
    xp = jnp.einsum('mn,btmc->btnc', s, x)
    y = (xp @ w1 + b1) * jax.nn.sigmoid(xp @ w2 + b2)
    ent = jnp.mean(jnp.sum(-s * jnp.log(s + 1e-15), axis=-1))
    return y, s, ent


if __name__ == "__main__":
    # Module hyper-params (small, consistent with the constructor):
    #   d_model = 32, num_of_node = 16, idx = 0
    #   -> M = 16, N = 4, rank R = d_model // 2 = 16, C = d_model = 32
    B, T, M, C = 2, 8, 16, 32
    N, R = 4, C // 2

    key = jax.random.PRNGKey(0)
    kx, kp, kq, kw1, kb1, kw2, kb2 = jax.random.split(key, 7)

    x = jax.random.normal(kx, (B, T, M, C), dtype=jnp.float32)
    # matrix_decomposition parameters (low-rank factors of the assignment logits)
    P = jax.random.normal(kp, (M, R), dtype=jnp.float32) * 0.1
    Q = jax.random.normal(kq, (R, N), dtype=jnp.float32) * 0.1
    # glu parameters (linear maps on the channel axis)
    w1 = jax.random.normal(kw1, (C, C), dtype=jnp.float32) * (1.0 / jnp.sqrt(C))
    b1 = jax.random.normal(kb1, (1, C), dtype=jnp.float32) * 0.01
    w2 = jax.random.normal(kw2, (C, C), dtype=jnp.float32) * (1.0 / jnp.sqrt(C))
    b2 = jax.random.normal(kb2, (1, C), dtype=jnp.float32) * 0.01

    out, s, ent = diff_pool_forward(x, P, Q, w1, b1, w2, b2)
    jax.block_until_ready((out, s, ent))

    out_ref, s_ref, ent_ref = diff_pool_reference(x, P, Q, w1, b1, w2, b2)
    assert out.shape == (B, T, N, C)
    assert s.shape == (M, N)
    assert jnp.allclose(out, out_ref, rtol=1e-4, atol=1e-4), "output mismatch"
    assert jnp.allclose(s, s_ref, rtol=1e-5, atol=1e-6), "s mismatch"
    assert jnp.allclose(ent, ent_ref, rtol=1e-5, atol=1e-6), "ent_loss mismatch"

    print("KERNEL_OK")
</pallas_src>

<mosaic_0001>
module attributes {stable_mosaic.version = 11 : i64} {
  func.func @_diff_pool_kernel(%arg0: i32, %arg1: memref<16x16xf32, #tpu.memory_space<vmem>>, %arg2: memref<16x4xf32, #tpu.memory_space<vmem>>, %arg3: memref<16x16x32xf32, #tpu.memory_space<vmem>>, %arg4: memref<32x32xf32, #tpu.memory_space<vmem>>, %arg5: memref<1x32xf32, #tpu.memory_space<vmem>>, %arg6: memref<32x32xf32, #tpu.memory_space<vmem>>, %arg7: memref<1x32xf32, #tpu.memory_space<vmem>>, %arg8: memref<64x32xf32, #tpu.memory_space<vmem>>, %arg9: memref<16x4xf32, #tpu.memory_space<vmem>>, %arg10: memref<1x1xf32, #tpu.memory_space<vmem>>, %arg11: memref<64x32xf32, #tpu.memory_space<vmem>>) attributes {dimension_semantics = [#tpu.dimension_semantics<arbitrary>], iteration_bounds = array<i64: 1>, scalar_prefetch = 0 : i64, scratch_operands = 1 : i64, tpu.core_type = #tpu.core_type<tc>, window_params = [{pipeline_mode = #tpu.pipeline_mode<synchronous>, transform_indices = @transform_0, window_bounds = array<i64: 16, 16>}, {pipeline_mode = #tpu.pipeline_mode<synchronous>, transform_indices = @transform_1, window_bounds = array<i64: 16, 4>}, {pipeline_mode = #tpu.pipeline_mode<synchronous>, transform_indices = @transform_2, window_bounds = array<i64: 16, 16, 32>}, {pipeline_mode = #tpu.pipeline_mode<synchronous>, transform_indices = @transform_3, window_bounds = array<i64: 32, 32>}, {pipeline_mode = #tpu.pipeline_mode<synchronous>, transform_indices = @transform_4, window_bounds = array<i64: 1, 32>}, {pipeline_mode = #tpu.pipeline_mode<synchronous>, transform_indices = @transform_5, window_bounds = array<i64: 32, 32>}, {pipeline_mode = #tpu.pipeline_mode<synchronous>, transform_indices = @transform_6, window_bounds = array<i64: 1, 32>}, {pipeline_mode = #tpu.pipeline_mode<synchronous>, transform_indices = @transform_7, window_bounds = array<i64: 64, 32>}, {pipeline_mode = #tpu.pipeline_mode<synchronous>, transform_indices = @transform_8, window_bounds = array<i64: 16, 4>}, {pipeline_mode = #tpu.pipeline_mode<synchronous>, transform_indices = @transform_9, window_bounds = array<i64: 1, 1>}]} {
    %c0 = arith.constant 0 : index
    %c0_0 = arith.constant 0 : index
    %0 = vector.load %arg1[%c0, %c0_0] : memref<16x16xf32, #tpu.memory_space<vmem>>, vector<16x16xf32>
    %c0_1 = arith.constant 0 : index
    %c0_2 = arith.constant 0 : index
    %1 = vector.load %arg2[%c0_1, %c0_2] : memref<16x4xf32, #tpu.memory_space<vmem>>, vector<16x4xf32>
    %cst = arith.constant dense<0.000000e+00> : vector<16x4xf32>
    %2 = tpu.matmul %0, %1, %cst {dimension_numbers = #tpu.dot_dimension_numbers<[1], [0], [0], [1], [0, 0, 1, 1], [], []>} : vector<16x16xf32>, vector<16x4xf32>, vector<16x4xf32> -> vector<16x4xf32>
    %cst_3 = arith.constant dense<0xFF800000> : vector<16xf32>
    %3 = vector.multi_reduction <maximumf>, %2, %cst_3 [1] : vector<16x4xf32> to vector<16xf32>
    %4 = vector.shape_cast %3 : vector<16xf32> to vector<16x1xf32>
    %5 = vector.broadcast %4 : vector<16x1xf32> to vector<16x4xf32>
    %6 = arith.subf %2, %5 : vector<16x4xf32>
    %7 = math.exp %6 : vector<16x4xf32>
    %cst_4 = arith.constant dense<0.000000e+00> : vector<16xf32>
    %8 = vector.multi_reduction <add>, %7, %cst_4 [1] : vector<16x4xf32> to vector<16xf32>
    %9 = vector.shape_cast %8 : vector<16xf32> to vector<16x1xf32>
    %10 = vector.broadcast %9 : vector<16x1xf32> to vector<16x4xf32>
    %11 = arith.divf %7, %10 : vector<16x4xf32>
    %c0_5 = arith.constant 0 : index
    %c0_6 = arith.constant 0 : index
    %12 = vector.load %arg9[%c0_5, %c0_6] : memref<16x4xf32, #tpu.memory_space<vmem>>, vector<16x4xf32>
    tpu.vector_store %arg9[%c0_5, %c0_6], %11 {strides = array<i32>} : memref<16x4xf32, #tpu.memory_space<vmem>>, vector<16x4xf32>,
    %cst_7 = arith.constant 0.000000e+00 : f32
    %13 = vector.broadcast %cst_7 : f32 to vector<16x4xf32>
    %14 = arith.subf %13, %11 : vector<16x4xf32>
    %cst_8 = arith.constant 1.000000e-15 : f32
    %15 = vector.broadcast %cst_8 : f32 to vector<16x4xf32>
    %16 = arith.addf %11, %15 : vector<16x4xf32>
    %17 = math.log %16 : vector<16x4xf32>
    %18 = arith.mulf %14, %17 : vector<16x4xf32>
    %cst_9 = arith.constant dense<0.000000e+00> : vector<16xf32>
    %19 = vector.multi_reduction <add>, %18, %cst_9 [1] : vector<16x4xf32> to vector<16xf32>
    %20 = vector.shape_cast %19 : vector<16xf32> to vector<16x1xf32>
    %cst_10 = arith.constant dense<0.000000e+00> : vector<1xf32>
    %21 = vector.multi_reduction <add>, %20, %cst_10 [0] : vector<16x1xf32> to vector<1xf32>
    %22 = vector.shape_cast %21 : vector<1xf32> to vector<1x1xf32>
    %cst_11 = arith.constant 1.600000e+01 : f32
    %23 = vector.broadcast %cst_11 : f32 to vector<1x1xf32>
    %24 = arith.divf %22, %23 : vector<1x1xf32>
    %c0_12 = arith.constant 0 : index
    %c0_13 = arith.constant 0 : index
    %25 = vector.load %arg10[%c0_12, %c0_13] : memref<1x1xf32, #tpu.memory_space<vmem>>, vector<1x1xf32>
    tpu.vector_store %arg10[%c0_12, %c0_13], %24 {strides = array<i32>} : memref<1x1xf32, #tpu.memory_space<vmem>>, vector<1x1xf32>,
    %c0_14 = arith.constant 0 : index
    %c0_15 = arith.constant 0 : index
    %c0_16 = arith.constant 0 : index
    %26 = vector.load %arg3[%c0_14, %c0_15, %c0_16] : memref<16x16x32xf32, #tpu.memory_space<vmem>>, vector<1x16x32xf32>
    %27 = vector.shape_cast %26 : vector<1x16x32xf32> to vector<16x32xf32>
    %cst_17 = arith.constant dense<0.000000e+00> : vector<4x32xf32>
    %28 = tpu.matmul %11, %27, %cst_17 {dimension_numbers = #tpu.dot_dimension_numbers<[0], [0], [1], [1], [0, 1, 1, 1], [], []>} : vector<16x4xf32>, vector<16x32xf32>, vector<4x32xf32> -> vector<4x32xf32>
    %c0_18 = arith.constant 0 : index
    %c0_19 = arith.constant 0 : index
    %29 = vector.load %arg11[%c0_18, %c0_19] : memref<64x32xf32, #tpu.memory_space<vmem>>, vector<4x32xf32>
    tpu.vector_store %arg11[%c0_18, %c0_19], %28 {strides = array<i32>} : memref<64x32xf32, #tpu.memory_space<vmem>>, vector<4x32xf32>,
    %c1 = arith.constant 1 : index
    %c0_20 = arith.constant 0 : index
    %c0_21 = arith.constant 0 : index
    %30 = vector.load %arg3[%c1, %c0_20, %c0_21] : memref<16x16x32xf32, #tpu.memory_space<vmem>>, vector<1x16x32xf32>
    %31 = vector.shape_cast %30 : vector<1x16x32xf32> to vector<16x32xf32>
    %cst_22 = arith.constant dense<0.000000e+00> : vector<4x32xf32>
    %32 = tpu.matmul %11, %31, %cst_22 {dimension_numbers = #tpu.dot_dimension_numbers<[0], [0], [1], [1], [0, 1, 1, 1], [], []>} : vector<16x4xf32>, vector<16x32xf32>, vector<4x32xf32> -> vector<4x32xf32>
    %c4 = arith.constant 4 : index
    %c0_23 = arith.constant 0 : index
    %33 = vector.load %arg11[%c4, %c0_23] : memref<64x32xf32, #tpu.memory_space<vmem>>, vector<4x32xf32>
    tpu.vector_store %arg11[%c4, %c0_23], %32 {strides = array<i32>} : memref<64x32xf32, #tpu.memory_space<vmem>>, vector<4x32xf32>,
    %c2 = arith.constant 2 : index
    %c0_24 = arith.constant 0 : index
    %c0_25 = arith.constant 0 : index
    %34 = vector.load %arg3[%c2, %c0_24, %c0_25] : memref<16x16x32xf32, #tpu.memory_space<vmem>>, vector<1x16x32xf32>
    %35 = vector.shape_cast %34 : vector<1x16x32xf32> to vector<16x32xf32>
    %cst_26 = arith.constant dense<0.000000e+00> : vector<4x32xf32>
    %36 = tpu.matmul %11, %35, %cst_26 {dimension_numbers = #tpu.dot_dimension_numbers<[0], [0], [1], [1], [0, 1, 1, 1], [], []>} : vector<16x4xf32>, vector<16x32xf32>, vector<4x32xf32> -> vector<4x32xf32>
    %c8 = arith.constant 8 : index
    %c0_27 = arith.constant 0 : index
    %37 = vector.load %arg11[%c8, %c0_27] : memref<64x32xf32, #tpu.memory_space<vmem>>, vector<4x32xf32>
    tpu.vector_store %arg11[%c8, %c0_27], %36 {strides = array<i32>} : memref<64x32xf32, #tpu.memory_space<vmem>>, vector<4x32xf32>,
    %c3 = arith.constant 3 : index
    %c0_28 = arith.constant 0 : index
    %c0_29 = arith.constant 0 : index
    %38 = vector.load %arg3[%c3, %c0_28, %c0_29] : memref<16x16x32xf32, #tpu.memory_space<vmem>>, vector<1x16x32xf32>
    %39 = vector.shape_cast %38 : vector<1x16x32xf32> to vector<16x32xf32>
    %cst_30 = arith.constant dense<0.000000e+00> : vector<4x32xf32>
    %40 = tpu.matmul %11, %39, %cst_30 {dimension_numbers = #tpu.dot_dimension_numbers<[0], [0], [1], [1], [0, 1, 1, 1], [], []>} : vector<16x4xf32>, vector<16x32xf32>, vector<4x32xf32> -> vector<4x32xf32>
    %c12 = arith.constant 12 : index
    %c0_31 = arith.constant 0 : index
    %41 = vector.load %arg11[%c12, %c0_31] : memref<64x32xf32, #tpu.memory_space<vmem>>, vector<4x32xf32>
    tpu.vector_store %arg11[%c12, %c0_31], %40 {strides = array<i32>} : memref<64x32xf32, #tpu.memory_space<vmem>>, vector<4x32xf32>,
    %c4_32 = arith.constant 4 : index
    %c0_33 = arith.constant 0 : index
    %c0_34 = arith.constant 0 : index
    %42 = vector.load %arg3[%c4_32, %c0_33, %c0_34] : memref<16x16x32xf32, #tpu.memory_space<vmem>>, vector<1x16x32xf32>
    %43 = vector.shape_cast %42 : vector<1x16x32xf32> to vector<16x32xf32>
    %cst_35 = arith.constant dense<0.000000e+00> : vector<4x32xf32>
    %44 = tpu.matmul %11, %43, %cst_35 {dimension_numbers = #tpu.dot_dimension_numbers<[0], [0], [1], [1], [0, 1, 1, 1], [], []>} : vector<16x4xf32>, vector<16x32xf32>, vector<4x32xf32> -> vector<4x32xf32>
    %c16 = arith.constant 16 : index
    %c0_36 = arith.constant 0 : index
    %45 = vector.load %arg11[%c16, %c0_36] : memref<64x32xf32, #tpu.memory_space<vmem>>, vector<4x32xf32>
    tpu.vector_store %arg11[%c16, %c0_36], %44 {strides = array<i32>} : memref<64x32xf32, #tpu.memory_space<vmem>>, vector<4x32xf32>,
    %c5 = arith.constant 5 : index
    %c0_37 = arith.constant 0 : index
    %c0_38 = arith.constant 0 : index
    %46 = vector.load %arg3[%c5, %c0_37, %c0_38] : memref<16x16x32xf32, #tpu.memory_space<vmem>>, vector<1x16x32xf32>
    %47 = vector.shape_cast %46 : vector<1x16x32xf32> to vector<16x32xf32>
    %cst_39 = arith.constant dense<0.000000e+00> : vector<4x32xf32>
    %48 = tpu.matmul %11, %47, %cst_39 {dimension_numbers = #tpu.dot_dimension_numbers<[0], [0], [1], [1], [0, 1, 1, 1], [], []>} : vector<16x4xf32>, vector<16x32xf32>, vector<4x32xf32> -> vector<4x32xf32>
    %c20 = arith.constant 20 : index
    %c0_40 = arith.constant 0 : index
    %49 = vector.load %arg11[%c20, %c0_40] : memref<64x32xf32, #tpu.memory_space<vmem>>, vector<4x32xf32>
    tpu.vector_store %arg11[%c20, %c0_40], %48 {strides = array<i32>} : memref<64x32xf32, #tpu.memory_space<vmem>>, vector<4x32xf32>,
    %c6 = arith.constant 6 : index
    %c0_41 = arith.constant 0 : index
    %c0_42 = arith.constant 0 : index
    %50 = vector.load %arg3[%c6, %c0_41, %c0_42] : memref<16x16x32xf32, #tpu.memory_space<vmem>>, vector<1x16x32xf32>
    %51 = vector.shape_cast %50 : vector<1x16x32xf32> to vector<16x32xf32>
    %cst_43 = arith.constant dense<0.000000e+00> : vector<4x32xf32>
    %52 = tpu.matmul %11, %51, %cst_43 {dimension_numbers = #tpu.dot_dimension_numbers<[0], [0], [1], [1], [0, 1, 1, 1], [], []>} : vector<16x4xf32>, vector<16x32xf32>, vector<4x32xf32> -> vector<4x32xf32>
    %c24 = arith.constant 24 : index
    %c0_44 = arith.constant 0 : index
    %53 = vector.load %arg11[%c24, %c0_44] : memref<64x32xf32, #tpu.memory_space<vmem>>, vector<4x32xf32>
    tpu.vector_store %arg11[%c24, %c0_44], %52 {strides = array<i32>} : memref<64x32xf32, #tpu.memory_space<vmem>>, vector<4x32xf32>,
    %c7 = arith.constant 7 : index
    %c0_45 = arith.constant 0 : index
    %c0_46 = arith.constant 0 : index
    %54 = vector.load %arg3[%c7, %c0_45, %c0_46] : memref<16x16x32xf32, #tpu.memory_space<vmem>>, vector<1x16x32xf32>
    %55 = vector.shape_cast %54 : vector<1x16x32xf32> to vector<16x32xf32>
    %cst_47 = arith.constant dense<0.000000e+00> : vector<4x32xf32>
    %56 = tpu.matmul %11, %55, %cst_47 {dimension_numbers = #tpu.dot_dimension_numbers<[0], [0], [1], [1], [0, 1, 1, 1], [], []>} : vector<16x4xf32>, vector<16x32xf32>, vector<4x32xf32> -> vector<4x32xf32>
    %c28 = arith.constant 28 : index
    %c0_48 = arith.constant 0 : index
    %57 = vector.load %arg11[%c28, %c0_48] : memref<64x32xf32, #tpu.memory_space<vmem>>, vector<4x32xf32>
    tpu.vector_store %arg11[%c28, %c0_48], %56 {strides = array<i32>} : memref<64x32xf32, #tpu.memory_space<vmem>>, vector<4x32xf32>,
    %c8_49 = arith.constant 8 : index
    %c0_50 = arith.constant 0 : index
    %c0_51 = arith.constant 0 : index
    %58 = vector.load %arg3[%c8_49, %c0_50, %c0_51] : memref<16x16x32xf32, #tpu.memory_space<vmem>>, vector<1x16x32xf32>
    %59 = vector.shape_cast %58 : vector<1x16x32xf32> to vector<16x32xf32>
    %cst_52 = arith.constant dense<0.000000e+00> : vector<4x32xf32>
    %60 = tpu.matmul %11, %59, %cst_52 {dimension_numbers = #tpu.dot_dimension_numbers<[0], [0], [1], [1], [0, 1, 1, 1], [], []>} : vector<16x4xf32>, vector<16x32xf32>, vector<4x32xf32> -> vector<4x32xf32>
    %c32 = arith.constant 32 : index
    %c0_53 = arith.constant 0 : index
    %61 = vector.load %arg11[%c32, %c0_53] : memref<64x32xf32, #tpu.memory_space<vmem>>, vector<4x32xf32>
    tpu.vector_store %arg11[%c32, %c0_53], %60 {strides = array<i32>} : memref<64x32xf32, #tpu.memory_space<vmem>>, vector<4x32xf32>,
    %c9 = arith.constant 9 : index
    %c0_54 = arith.constant 0 : index
    %c0_55 = arith.constant 0 : index
    %62 = vector.load %arg3[%c9, %c0_54, %c0_55] : memref<16x16x32xf32, #tpu.memory_space<vmem>>, vector<1x16x32xf32>
    %63 = vector.shape_cast %62 : vector<1x16x32xf32> to vector<16x32xf32>
    %cst_56 = arith.constant dense<0.000000e+00> : vector<4x32xf32>
    %64 = tpu.matmul %11, %63, %cst_56 {dimension_numbers = #tpu.dot_dimension_numbers<[0], [0], [1], [1], [0, 1, 1, 1], [], []>} : vector<16x4xf32>, vector<16x32xf32>, vector<4x32xf32> -> vector<4x32xf32>
    %c36 = arith.constant 36 : index
    %c0_57 = arith.constant 0 : index
    %65 = vector.load %arg11[%c36, %c0_57] : memref<64x32xf32, #tpu.memory_space<vmem>>, vector<4x32xf32>
    tpu.vector_store %arg11[%c36, %c0_57], %64 {strides = array<i32>} : memref<64x32xf32, #tpu.memory_space<vmem>>, vector<4x32xf32>,
    %c10 = arith.constant 10 : index
    %c0_58 = arith.constant 0 : index
    %c0_59 = arith.constant 0 : index
    %66 = vector.load %arg3[%c10, %c0_58, %c0_59] : memref<16x16x32xf32, #tpu.memory_space<vmem>>, vector<1x16x32xf32>
    %67 = vector.shape_cast %66 : vector<1x16x32xf32> to vector<16x32xf32>
    %cst_60 = arith.constant dense<0.000000e+00> : vector<4x32xf32>
    %68 = tpu.matmul %11, %67, %cst_60 {dimension_numbers = #tpu.dot_dimension_numbers<[0], [0], [1], [1], [0, 1, 1, 1], [], []>} : vector<16x4xf32>, vector<16x32xf32>, vector<4x32xf32> -> vector<4x32xf32>
    %c40 = arith.constant 40 : index
    %c0_61 = arith.constant 0 : index
    %69 = vector.load %arg11[%c40, %c0_61] : memref<64x32xf32, #tpu.memory_space<vmem>>, vector<4x32xf32>
    tpu.vector_store %arg11[%c40, %c0_61], %68 {strides = array<i32>} : memref<64x32xf32, #tpu.memory_space<vmem>>, vector<4x32xf32>,
    %c11 = arith.constant 11 : index
    %c0_62 = arith.constant 0 : index
    %c0_63 = arith.constant 0 : index
    %70 = vector.load %arg3[%c11, %c0_62, %c0_63] : memref<16x16x32xf32, #tpu.memory_space<vmem>>, vector<1x16x32xf32>
    %71 = vector.shape_cast %70 : vector<1x16x32xf32> to vector<16x32xf32>
    %cst_64 = arith.constant dense<0.000000e+00> : vector<4x32xf32>
    %72 = tpu.matmul %11, %71, %cst_64 {dimension_numbers = #tpu.dot_dimension_numbers<[0], [0], [1], [1], [0, 1, 1, 1], [], []>} : vector<16x4xf32>, vector<16x32xf32>, vector<4x32xf32> -> vector<4x32xf32>
    %c44 = arith.constant 44 : index
    %c0_65 = arith.constant 0 : index
    %73 = vector.load %arg11[%c44, %c0_65] : memref<64x32xf32, #tpu.memory_space<vmem>>, vector<4x32xf32>
    tpu.vector_store %arg11[%c44, %c0_65], %72 {strides = array<i32>} : memref<64x32xf32, #tpu.memory_space<vmem>>, vector<4x32xf32>,
    %c12_66 = arith.constant 12 : index
    %c0_67 = arith.constant 0 : index
    %c0_68 = arith.constant 0 : index
    %74 = vector.load %arg3[%c12_66, %c0_67, %c0_68] : memref<16x16x32xf32, #tpu.memory_space<vmem>>, vector<1x16x32xf32>
    %75 = vector.shape_cast %74 : vector<1x16x32xf32> to vector<16x32xf32>
    %cst_69 = arith.constant dense<0.000000e+00> : vector<4x32xf32>
    %76 = tpu.matmul %11, %75, %cst_69 {dimension_numbers = #tpu.dot_dimension_numbers<[0], [0], [1], [1], [0, 1, 1, 1], [], []>} : vector<16x4xf32>, vector<16x32xf32>, vector<4x32xf32> -> vector<4x32xf32>
    %c48 = arith.constant 48 : index
    %c0_70 = arith.constant 0 : index
    %77 = vector.load %arg11[%c48, %c0_70] : memref<64x32xf32, #tpu.memory_space<vmem>>, vector<4x32xf32>
    tpu.vector_store %arg11[%c48, %c0_70], %76 {strides = array<i32>} : memref<64x32xf32, #tpu.memory_space<vmem>>, vector<4x32xf32>,
    %c13 = arith.constant 13 : index
    %c0_71 = arith.constant 0 : index
    %c0_72 = arith.constant 0 : index
    %78 = vector.load %arg3[%c13, %c0_71, %c0_72] : memref<16x16x32xf32, #tpu.memory_space<vmem>>, vector<1x16x32xf32>
    %79 = vector.shape_cast %78 : vector<1x16x32xf32> to vector<16x32xf32>
    %cst_73 = arith.constant dense<0.000000e+00> : vector<4x32xf32>
    %80 = tpu.matmul %11, %79, %cst_73 {dimension_numbers = #tpu.dot_dimension_numbers<[0], [0], [1], [1], [0, 1, 1, 1], [], []>} : vector<16x4xf32>, vector<16x32xf32>, vector<4x32xf32> -> vector<4x32xf32>
    %c52 = arith.constant 52 : index
    %c0_74 = arith.constant 0 : index
    %81 = vector.load %arg11[%c52, %c0_74] : memref<64x32xf32, #tpu.memory_space<vmem>>, vector<4x32xf32>
    tpu.vector_store %arg11[%c52, %c0_74], %80 {strides = array<i32>} : memref<64x32xf32, #tpu.memory_space<vmem>>, vector<4x32xf32>,
    %c14 = arith.constant 14 : index
    %c0_75 = arith.constant 0 : index
    %c0_76 = arith.constant 0 : index
    %82 = vector.load %arg3[%c14, %c0_75, %c0_76] : memref<16x16x32xf32, #tpu.memory_space<vmem>>, vector<1x16x32xf32>
    %83 = vector.shape_cast %82 : vector<1x16x32xf32> to vector<16x32xf32>
    %cst_77 = arith.constant dense<0.000000e+00> : vector<4x32xf32>
    %84 = tpu.matmul %11, %83, %cst_77 {dimension_numbers = #tpu.dot_dimension_numbers<[0], [0], [1], [1], [0, 1, 1, 1], [], []>} : vector<16x4xf32>, vector<16x32xf32>, vector<4x32xf32> -> vector<4x32xf32>
    %c56 = arith.constant 56 : index
    %c0_78 = arith.constant 0 : index
    %85 = vector.load %arg11[%c56, %c0_78] : memref<64x32xf32, #tpu.memory_space<vmem>>, vector<4x32xf32>
    tpu.vector_store %arg11[%c56, %c0_78], %84 {strides = array<i32>} : memref<64x32xf32, #tpu.memory_space<vmem>>, vector<4x32xf32>,
    %c15 = arith.constant 15 : index
    %c0_79 = arith.constant 0 : index
    %c0_80 = arith.constant 0 : index
    %86 = vector.load %arg3[%c15, %c0_79, %c0_80] : memref<16x16x32xf32, #tpu.memory_space<vmem>>, vector<1x16x32xf32>
    %87 = vector.shape_cast %86 : vector<1x16x32xf32> to vector<16x32xf32>
    %cst_81 = arith.constant dense<0.000000e+00> : vector<4x32xf32>
    %88 = tpu.matmul %11, %87, %cst_81 {dimension_numbers = #tpu.dot_dimension_numbers<[0], [0], [1], [1], [0, 1, 1, 1], [], []>} : vector<16x4xf32>, vector<16x32xf32>, vector<4x32xf32> -> vector<4x32xf32>
    %c60 = arith.constant 60 : index
    %c0_82 = arith.constant 0 : index
    %89 = vector.load %arg11[%c60, %c0_82] : memref<64x32xf32, #tpu.memory_space<vmem>>, vector<4x32xf32>
    tpu.vector_store %arg11[%c60, %c0_82], %88 {strides = array<i32>} : memref<64x32xf32, #tpu.memory_space<vmem>>, vector<4x32xf32>,
    %c0_83 = arith.constant 0 : index
    %c0_84 = arith.constant 0 : index
    %90 = vector.load %arg11[%c0_83, %c0_84] : memref<64x32xf32, #tpu.memory_space<vmem>>, vector<64x32xf32>
    %c0_85 = arith.constant 0 : index
    %c0_86 = arith.constant 0 : index
    %91 = vector.load %arg4[%c0_85, %c0_86] : memref<32x32xf32, #tpu.memory_space<vmem>>, vector<32x32xf32>
    %cst_87 = arith.constant dense<0.000000e+00> : vector<64x32xf32>
    %92 = tpu.matmul %90, %91, %cst_87 {dimension_numbers = #tpu.dot_dimension_numbers<[1], [0], [0], [1], [0, 0, 1, 1], [], []>} : vector<64x32xf32>, vector<32x32xf32>, vector<64x32xf32> -> vector<64x32xf32>
    %c0_88 = arith.constant 0 : index
    %c0_89 = arith.constant 0 : index
    %93 = vector.load %arg5[%c0_88, %c0_89] : memref<1x32xf32, #tpu.memory_space<vmem>>, vector<1x32xf32>
    %94 = vector.broadcast %93 : vector<1x32xf32> to vector<64x32xf32>
    %95 = arith.addf %92, %94 : vector<64x32xf32>
    %c0_90 = arith.constant 0 : index
    %c0_91 = arith.constant 0 : index
    %96 = vector.load %arg6[%c0_90, %c0_91] : memref<32x32xf32, #tpu.memory_space<vmem>>, vector<32x32xf32>
    %cst_92 = arith.constant dense<0.000000e+00> : vector<64x32xf32>
    %97 = tpu.matmul %90, %96, %cst_92 {dimension_numbers = #tpu.dot_dimension_numbers<[1], [0], [0], [1], [0, 0, 1, 1], [], []>} : vector<64x32xf32>, vector<32x32xf32>, vector<64x32xf32> -> vector<64x32xf32>
    %c0_93 = arith.constant 0 : index
    %c0_94 = arith.constant 0 : index
    %98 = vector.load %arg7[%c0_93, %c0_94] : memref<1x32xf32, #tpu.memory_space<vmem>>, vector<1x32xf32>
    %99 = vector.broadcast %98 : vector<1x32xf32> to vector<64x32xf32>
    %100 = arith.addf %97, %99 : vector<64x32xf32>
    %101 = arith.negf %100 : vector<64x32xf32>
    %102 = math.exp %101 : vector<64x32xf32>
    %cst_95 = arith.constant 1.000000e+00 : f32
    %103 = vector.broadcast %cst_95 : f32 to vector<64x32xf32>
    %104 = arith.addf %103, %102 : vector<64x32xf32>
    %105 = arith.divf %103, %104 : vector<64x32xf32>
    %106 = arith.mulf %95, %105 : vector<64x32xf32>
    %c0_96 = arith.constant 0 : index
    %c0_97 = arith.constant 0 : index
    %107 = vector.load %arg8[%c0_96, %c0_97] : memref<64x32xf32, #tpu.memory_space<vmem>>, vector<64x32xf32>
    tpu.vector_store %arg8[%c0_96, %c0_97], %106 {strides = array<i32>} : memref<64x32xf32, #tpu.memory_space<vmem>>, vector<64x32xf32>,
    return
  }
  func.func @transform_0(%arg0: i32) -> (i32, i32) {
    %c0_i32 = arith.constant 0 : i32
    %c0_i32_0 = arith.constant 0 : i32
    %c0_i32_1 = arith.constant 0 : i32
    return %c0_i32, %c0_i32_0 : i32, i32
  }
  func.func @transform_1(%arg0: i32) -> (i32, i32) {
    %c0_i32 = arith.constant 0 : i32
    %c0_i32_0 = arith.constant 0 : i32
    %c0_i32_1 = arith.constant 0 : i32
    return %c0_i32, %c0_i32_0 : i32, i32
  }
  func.func @transform_2(%arg0: i32) -> (i32, i32, i32) {
    %c0_i32 = arith.constant 0 : i32
    %c0_i32_0 = arith.constant 0 : i32
    %c0_i32_1 = arith.constant 0 : i32
    %c0_i32_2 = arith.constant 0 : i32
    return %c0_i32, %c0_i32_0, %c0_i32_1 : i32, i32, i32
  }
  func.func @transform_3(%arg0: i32) -> (i32, i32) {
    %c0_i32 = arith.constant 0 : i32
    %c0_i32_0 = arith.constant 0 : i32
    %c0_i32_1 = arith.constant 0 : i32
    return %c0_i32, %c0_i32_0 : i32, i32
  }
  func.func @transform_4(%arg0: i32) -> (i32, i32) {
    %c0_i32 = arith.constant 0 : i32
    %c0_i32_0 = arith.constant 0 : i32
    %c0_i32_1 = arith.constant 0 : i32
    return %c0_i32, %c0_i32_0 : i32, i32
  }
  func.func @transform_5(%arg0: i32) -> (i32, i32) {
    %c0_i32 = arith.constant 0 : i32
    %c0_i32_0 = arith.constant 0 : i32
    %c0_i32_1 = arith.constant 0 : i32
    return %c0_i32, %c0_i32_0 : i32, i32
  }
  func.func @transform_6(%arg0: i32) -> (i32, i32) {
    %c0_i32 = arith.constant 0 : i32
    %c0_i32_0 = arith.constant 0 : i32
    %c0_i32_1 = arith.constant 0 : i32
    return %c0_i32, %c0_i32_0 : i32, i32
  }
  func.func @transform_7(%arg0: i32) -> (i32, i32) {
    %c0_i32 = arith.constant 0 : i32
    %c0_i32_0 = arith.constant 0 : i32
    %c0_i32_1 = arith.constant 0 : i32
    return %c0_i32, %c0_i32_0 : i32, i32
  }
  func.func @transform_8(%arg0: i32) -> (i32, i32) {
    %c0_i32 = arith.constant 0 : i32
    %c0_i32_0 = arith.constant 0 : i32
    %c0_i32_1 = arith.constant 0 : i32
    return %c0_i32, %c0_i32_0 : i32, i32
  }
  func.func @transform_9(%arg0: i32) -> (i32, i32) {
    %c0_i32 = arith.constant 0 : i32
    %c0_i32_0 = arith.constant 0 : i32
    %c0_i32_1 = arith.constant 0 : i32
    return %c0_i32, %c0_i32_0 : i32, i32
  }
}

</mosaic_0001>

<bundles_post_ra>
// kernel: diff_pool_forward.1
= control target key start
LH: loop header
LB: loop body
LE: loop exit
PB: predicated region body
PF: predicated region fallthrough
CT: control target
= control target key end

     0   :  { %15 = vsyncpa [#allocation4], 0  ;;  %s2502_s0 = inlined_call_operand.vmem [shape: f32[16,16], index: 0, kind: input, shape index: {}]   ;;  %s2503_s1 = inlined_call_operand.vmem [shape: f32[16,4], index: 1, kind: input, shape index: {}]   ;;  %s2504_s2 = inlined_call_operand.hbm [shape: f32[16,16,32], index: 2, kind: input, shape index: {}]   ;;  %s2505_s3 = inlined_call_operand.hbm [shape: f32[32,32], index: 3, kind: input, shape index: {}]   ;;  %s2506_s4 = inlined_call_operand.vmem [shape: f32[1,32], index: 4, kind: input, shape index: {}]   ;;  %s2507_s5 = inlined_call_operand.hbm [shape: f32[32,32], index: 5, kind: input, shape index: {}]   ;;  %s2508_s6 = inlined_call_operand.vmem [shape: f32[1,32], index: 6, kind: input, shape index: {}]   ;;  %s2509_s7 = inlined_call_operand.hbm [shape: f32[64,32], index: 7, kind: output, shape index: {0}]   ;;  %s2510_s8 = inlined_call_operand.vmem [shape: f32[16,4], index: 8, kind: output, shape index: {1}]   ;;  %s2511_s9 = inlined_call_operand.hbm [shape: f32[1,1], index: 9, kind: output, shape index: {2}]  }
   0x1   :  { %16 = vsyncpa [#allocation7], 0 }
   0x2   :  { %17 = vsyncpa [#allocation5], 0 }
   0x3   :  { %18 = vsyncpa [#allocation11], 0  ;;  %s2234_s30 = smov [#allocation6]   ;;  %s2235_s11 = smov [#allocation3]  }
   0x4   :  { %s40_s10 = sshll.u32 %s2234_s30, 4  ;;  %s28_s12 = sshll.u32 %s2235_s11, 4  ;;  %s41_s10 = int_to_ptr.vmem [resolvable:$true] %s40_s10  ;;  %s29_s12 = int_to_ptr.vmem [resolvable:$true] %s28_s12 }
   0x5   :  { %s2134_s13 = scalar_lea.vmem %s41_s10, 512  ;;  %p2139_p1 = scmp.lt.s32.totalorder %s41_s10, %s41_s10 }
   0x6   :  { %p2135_p0 = scmp.ne.s32.totalorder %s41_s10, %s2134_s13  ;;  %p2140_p2 = scmp.lt.s32.totalorder %s2134_s13, %s2134_s13 }
   0x8   :  { %p2141_p3 = por %p2140_p2, %p2139_p1 }
   0xa   :  { %p2142_p4 = pnand %p2141_p3, %p2135_p0 }
   0xc   :  { %2145 = shalt.err (!%p2142_p4)
}
   0xd   :  { %s2236_s14 = smov 128   ;;  %s2237_s15 = smov 8  }
   0xe   :  { %46 = dma.hbm_to_vmem [thread:$0]  %s2505_s3, 512, %s41_s10, [#allocation7], %s2236_s14, %s2236_s14, %s2237_s15  }
   0xf   :  { %s2154_s18 = scalar_lea.vmem %s29_s12, 4096  ;;  %p2159_p6 = scmp.lt.s32.totalorder %s29_s12, %s29_s12 }
  0x10   :  { %p2155_p5 = scmp.ne.s32.totalorder %s29_s12, %s2154_s18  ;;  %p2160_p7 = scmp.lt.s32.totalorder %s2154_s18, %s2154_s18 }
  0x12   :  { %p2161_p8 = por %p2160_p7, %p2159_p6 }
  0x14   :  { %p2162_p9 = pnand %p2161_p8, %p2155_p5 }
  0x16   :  { %2165 = shalt.err (!%p2162_p9)
}
  0x17   :  { %34 = dma.hbm_to_vmem [thread:$0]  %s2504_s2, 4096, %s29_s12, [#allocation4], %s2236_s14, %s2236_s14, %s2237_s15  }
  0x18   :  { %s2238_s21 = smov [#allocation8]  }
  0x19   :  { %s54_s22 = sshll.u32 %s2238_s21, 4  ;;  %s55_s22 = int_to_ptr.vmem [resolvable:$true] %s54_s22 }
  0x1a   :  { %s2174_s23 = scalar_lea.vmem %s55_s22, 512  ;;  %p2179_p11 = scmp.lt.s32.totalorder %s55_s22, %s55_s22 }
  0x1b   :  { %p2175_p10 = scmp.ne.s32.totalorder %s55_s22, %s2174_s23  ;;  %p2180_p12 = scmp.lt.s32.totalorder %s2174_s23, %s2174_s23 }
  0x1d   :  { %p2181_p13 = por %p2180_p12, %p2179_p11 }
  0x1f   :  { %p2182_p0 = pnand %p2181_p13, %p2175_p10 }
  0x21   :  { %2185 = shalt.err (!%p2182_p0)
}
  0x22   :  { %60 = dma.hbm_to_vmem [thread:$0]  %s2507_s5, 512, %s55_s22, [#allocation7], %s2236_s14, %s2236_s14, %s2237_s15  }
  0x23   :  { %2226 = dma.done.wait [#allocation4], 4096  }
  0x24   :  { %2227 = vsyncadd [#allocation4], 4294963200 }
  0x25   :  { %2228 = dma.done.wait [#allocation7], 1024  }
  0x26   :  { %2229 = vsyncadd [#allocation7], 4294966272  ;;  %vm76_vm0 = vcmask 130048   ;;  %v75_v0 = vld [vmem:[%s2503_s1 + $0x8] sm:$0xff]  ;;  %v74_v1 = vld [vmem:[%s2503_s1] sm:$0xff]  ;;  %vm158_vm1 = vcmask 31744  }
  0x27   :  { %v72_v2 = vld [vmem:[%s2502_s0] sm:$0xff]  ;;  %1914 = vmatprep.subr.mxu0 %v75_v0  ;;  %v73_v3 = vld [vmem:[%s2502_s0 + $0x8] sm:$0xff]  ;;  %v321_v19 = vld [vmem:[#allocation3 + $0x18] sm:$0xff]  ;;  %v2239_v20 = vmov 0.0   ;;  %vm2240_vm2 = vmmov 0   ;;  %vm208_vm3 = vcmask 0  }
  0x28   :  { %1918 = vmatprep.mubr.msk.f32.mxu0 %vm76_vm0, %v72_v2  ;;  %1915 = vmatpush3.msra.mxu0 %v75_v0  ;;  %v211_v18 = vld [vmem:[#allocation3 + $0x8] sm:$0xff]  ;;  %v210_v21 = vld [vmem:[#allocation3] sm:$0xff]  ;;  %v320_v22 = vld [vmem:[#allocation3 + $0x10] sm:$0xff]  ;;  %vm317_vm4 = vcmask 257024   ;;  %vm1448_vm5 = vcmask 261120  }
  0x29   :  { %1916 = vmatprep.subr.mxu0 %v74_v1  ;;  %1921 = vmatprep.subr.mxu1 %v2239_v20  ;;  %v395_v41 = vld [vmem:[#allocation3 + $0x28] sm:$0xff]  ;;  %v469_v42 = vld [vmem:[#allocation3 + $0x38] sm:$0xff]  ;;  %v394_v44 = vld [vmem:[#allocation3 + $0x20] sm:$0xff] }
  0x2a   :  { %1917 = vmatpush3.msra.mxu0 %v74_v1  ;;  %1922 = vmatpush3.msra.mxu1 %v211_v18  ;;  %v468_v45 = vld [vmem:[#allocation3 + $0x30] sm:$0xff]  ;;  %v543_v46 = vld [vmem:[#allocation3 + $0x48] sm:$0xff]  ;;  %v617_v47 = vld [vmem:[#allocation3 + $0x58] sm:$0xff] }
  0x2b   :  { %1919 = vmatmul.mubr.msk.f32.vlgmr.msra.gmra.mxu0 %vm76_vm0, %v73_v3  ;;  %1928 = vmatprep.subr.mxu0 %v2239_v20  ;;  %v542_v48 = vld [vmem:[#allocation3 + $0x40] sm:$0xff]  ;;  %v616_v49 = vld [vmem:[#allocation3 + $0x50] sm:$0xff]  ;;  %v691_v50 = vld [vmem:[#allocation3 + $0x68] sm:$0xff] }
  0x2c   :  { %1929 = vmatpush3.msra.mxu0 %v321_v19  ;;  %1923 = vmatprep.subr.mxu1 %v2239_v20  ;;  %v765_v51 = vld [vmem:[#allocation3 + $0x78] sm:$0xff]  ;;  %v690_v52 = vld [vmem:[#allocation3 + $0x60] sm:$0xff]  ;;  %v764_v53 = vld [vmem:[#allocation3 + $0x70] sm:$0xff] }
  0x2d   :  { %1930 = vmatprep.subr.mxu0 %v2239_v20  ;;  %1924 = vmatpush3.msra.mxu1 %v210_v21  ;;  %v839_v54 = vld [vmem:[#allocation3 + $0x88] sm:$0xff]  ;;  %v913_v55 = vld [vmem:[#allocation3 + $0x98] sm:$0xff]  ;;  %v838_v56 = vld [vmem:[#allocation3 + $0x80] sm:$0xff] }
  0x2e   :  { %1931 = vmatpush3.msra.mxu0 %v320_v22  ;;  %1925 = vmatprep.mubr.msk.f32.mxu1 %vm2240_vm2, %v2239_v20  ;;  %v912_v57 = vld [vmem:[#allocation3 + $0x90] sm:$0xff]  ;;  %v987_v58 = vld [vmem:[#allocation3 + $0xa8] sm:$0xff]  ;;  %v1061_v59 = vld [vmem:[#allocation3 + $0xb8] sm:$0xff] }
  0x2f   :  { %1932 = vmatprep.mubr.msk.f32.mxu0 %vm2240_vm2, %v2239_v20  ;;  %1935 = vmatprep.subr.mxu1 %v2239_v20  ;;  %v986_v60 = vld [vmem:[#allocation3 + $0xa0] sm:$0xff]  ;;  %v1060_v61 = vld [vmem:[#allocation3 + $0xb0] sm:$0xff]  ;;  %v1135_v62 = vld [vmem:[#allocation3 + $0xc8] sm:$0xff] }
  0x30   :  { %1942 = vmatprep.subr.mxu0 %v2239_v20  ;;  %v1209_v63 = vld [vmem:[#allocation3 + $0xd8] sm:$0xff]  ;;  %v1134_v0 = vld [vmem:[#allocation3 + $0xc0] sm:$0xff]  ;;  %v1208_v1 = vld [vmem:[#allocation3 + $0xd0] sm:$0xff] }
  0x31   :  { %v1283_v3 = vld [vmem:[#allocation3 + $0xe8] sm:$0xff]  ;;  %v1439_v18 = vld [vmem:[#allocation6 + $0x10] sm:$0xff]  ;;  %v1437_v22 = vld [vmem:[#allocation6] sm:$0xff] }
  0x32   :  { %v1580_v19 = vld [vmem:[#allocation8 + $0x10] sm:$0xff]  ;;  %v1579_v21 = vld [vmem:[#allocation8 + $0x8] sm:$0xff] }
  0xeb   :  { %v1920_v4 = vpop.f32.mrf.mxu0 }
  0xec   :  { %v162_v7 = vsel %vm158_vm1, %v1920_v4, -inf }
  0xed   :  { %v149_v5 = vpop.f32.mrf.mxu0 }
  0xee   :  { %v159_v6 = vsel %vm158_vm1, %v149_v5, -inf }
  0xef   :  { %160 = vmax.xlane.f32.xlu0 %v159_v6  ;;  %v1356_v6 = vld [vmem:[#allocation3 + $0xf0] sm:$0xff] }
  0xf3   :  { %163 = vmax.xlane.f32.xlu0 %v162_v7 }
 0x178   :  { %v161_v8 = vpop.xlane.xlu0 %160 }
 0x179   :  { %v165_v9 = vsub.f32 %v149_v5, %v161_v8  ;;  %v1282_v5 = vld [vmem:[#allocation3 + $0xe0] sm:$0xff] }
 0x17b   :  { %v167_v10 = vmul.f32 1.442695, %v165_v9 }
 0x17c   :  { %v164_v11 = vpop.xlane.xlu0 %163 }
 0x17d   :  { %2082 = vpow2.f32 %v167_v10  ;;  %v166_v12 = vsub.f32 %v1920_v4, %v164_v11  ;;  %v1357_v4 = vld [vmem:[#allocation3 + $0xf8] sm:$0xff] }
 0x17f   :  { %v169_v13 = vmul.f32 1.442695, %v166_v12 }
 0x181   :  { %2084 = vpow2.f32 %v169_v13 }
 0x18a   :  { %v2083_v14 = vpop.eup %2082 }
 0x18b   :  { %v171_v15 = vsel %vm158_vm1, %v2083_v14, 0.0 }
 0x18c   :  { %172 = vadd.xlane.f32.xlu1 %v171_v15 }
 0x18e   :  { %v2085_v16 = vpop.eup %2084 }
 0x18f   :  { %v174_v17 = vsel %vm158_vm1, %v2085_v16, 0.0 }
 0x190   :  { %175 = vadd.xlane.f32.xlu1 %v174_v17  ;;  %v1581_v17 = vld [vmem:[#allocation8 + $0x18] sm:$0xff] }
 0x215   :  { %v173_v23 = vpop.xlane.xlu1 %172 }
 0x216   :  { %2086 = vrcp.f32 %v173_v23  ;;  %v1578_v23 = vld [vmem:[#allocation8] sm:$0xff] }
 0x219   :  { %v176_v24 = vpop.xlane.xlu1 %175 }
 0x21a   :  { %2088 = vrcp.f32 %v176_v24 }
 0x223   :  { %v2087_v25 = vpop.eup %2086 }
 0x224   :  { %v178_v26 = vmul.f32 %v2087_v25, %v2083_v14 }
 0x226   :  { %212 = vxpose.xlu0.b32.start [1/2] (short) (narrow) %v178_v26, 8  ;;  %181 = vst.msk [vmem:[%s2510_s8] sm:$0xff] %vm158_vm1, %v178_v26  ;;  %v185_v27 = vadd.f32 1e-15, %v178_v26  ;;  %v183_v32 = vsub.f32 0.0, %v178_v26 }
 0x227   :  { %v2089_v28 = vpop.eup %2088 }
 0x228   :  { %v180_v29 = vmul.f32 %v2089_v28, %v2085_v16  ;;  %2090 = vlog2.f32 %v185_v27  ;;  %v1440_v16 = vld [vmem:[#allocation6 + $0x18] sm:$0xff] }
 0x22a   :  { %213 = vxpose.xlu0.b32.end [2/2] (short) (narrow) %v180_v29, 8  ;;  %182 = vst.msk [vmem:[%s2510_s8 + $0x8] sm:$0xff] %vm158_vm1, %v180_v29  ;;  %v186_v30 = vadd.f32 1e-15, %v180_v29  ;;  %v184_v37 = vsub.f32 0.0, %v180_v29  ;;  %s2241_s8 = smov [#allocation10]  }
 0x22b   :  { %s1778_s12 = sshll.u32 %s2241_s8, 4  ;;  %s1779_s12 = int_to_ptr.vmem [resolvable:$true] %s1778_s12 }
 0x22c   :  { %2092 = vlog2.f32 %v186_v30  ;;  %s2186_s13 = scalar_lea.vmem %s1779_s12, 16  ;;  %s2190_s16 = scalar_lea.vmem %s1779_s12, 32 }
 0x22d   :  { %p2187_p1 = scmp.ne.s32.totalorder %s1779_s12, %s2186_s13  ;;  %p2191_p2 = scmp.lt.s32.totalorder %s1779_s12, %s1779_s12 }
 0x22e   :  { %p2192_p3 = scmp.lt.s32.totalorder %s2190_s16, %s2186_s13 }
 0x230   :  { %p2193_p4 = por %p2192_p3, %p2191_p2 }
 0x232   :  { %p2194_p5 = pnand %p2193_p4, %p2187_p1 }
 0x235   :  { %v2091_v31 = vpop.eup %2090 }
 0x236   :  { %v188_v33 = vmul.f32 0.6931472, %v2091_v31 }
 0x238   :  { %v191_v34 = vmul.f32 %v188_v33, %v183_v32 }
 0x239   :  { %v2093_v35 = vpop.eup %2092 }
 0x23a   :  { %v193_v36 = vsel %vm158_vm1, %v191_v34, 0.0  ;;  %v190_v38 = vmul.f32 0.6931472, %v2093_v35 }
 0x23b   :  { %194 = vadd.xlane.f32.xlu1 %v193_v36 }
 0x23c   :  { %v192_v39 = vmul.f32 %v190_v38, %v184_v37 }
 0x23e   :  { %v196_v40 = vsel %vm158_vm1, %v192_v39, 0.0 }
 0x23f   :  { %197 = vadd.xlane.f32.xlu1 %v196_v40 }
 0x2a2   :  { %v2349_v43 = vpop.trf.xlu0 }
 0x2a3   :  { %1926 = vmatmul.mubr.msk.f32.vlgmr.msra.gmra.mxu1 %vm76_vm0, %v2349_v43  ;;  %1933 = vmatmul.mubr.msk.f32.vlgmr.msra.gmra.mxu0 %vm76_vm0, %v2349_v43 }
 0x2a4   :  { %1936 = vmatpush3.msra.mxu1 %v395_v41  ;;  %1943 = vmatpush3.msra.mxu0 %v469_v42 }
 0x2a5   :  { %1937 = vmatprep.subr.mxu1 %v2239_v20  ;;  %1944 = vmatprep.subr.mxu0 %v2239_v20 }
 0x2a6   :  { %1938 = vmatpush3.msra.mxu1 %v394_v44  ;;  %1945 = vmatpush3.msra.mxu0 %v468_v45 }
 0x2a7   :  { %1939 = vmatprep.mubr.msk.f32.mxu1 %vm2240_vm2, %v2239_v20  ;;  %1946 = vmatprep.mubr.msk.f32.mxu0 %vm2240_vm2, %v2239_v20 }
 0x2a8   :  { %1949 = vmatprep.subr.mxu1 %v2239_v20  ;;  %1956 = vmatprep.subr.mxu0 %v2239_v20 }
 0x2a9   :  { %1940 = vmatmul.mubr.msk.f32.vlgmr.msra.gmra.mxu1 %vm76_vm0, %v2349_v43  ;;  %1947 = vmatmul.mubr.msk.f32.vlgmr.msra.gmra.mxu0 %vm76_vm0, %v2349_v43 }
 0x2aa   :  { %1950 = vmatpush3.msra.mxu1 %v543_v46  ;;  %1957 = vmatpush3.msra.mxu0 %v617_v47 }
 0x2ab   :  { %1951 = vmatprep.subr.mxu1 %v2239_v20  ;;  %1958 = vmatprep.subr.mxu0 %v2239_v20 }
 0x2ac   :  { %1952 = vmatpush3.msra.mxu1 %v542_v48  ;;  %1959 = vmatpush3.msra.mxu0 %v616_v49 }
 0x2ad   :  { %1953 = vmatprep.mubr.msk.f32.mxu1 %vm2240_vm2, %v2239_v20  ;;  %1960 = vmatprep.mubr.msk.f32.mxu0 %vm2240_vm2, %v2239_v20 }
 0x2ae   :  { %1963 = vmatprep.subr.mxu1 %v2239_v20  ;;  %1970 = vmatprep.subr.mxu0 %v2239_v20 }
 0x2af   :  { %1954 = vmatmul.mubr.msk.f32.vlgmr.msra.gmra.mxu1 %vm76_vm0, %v2349_v43  ;;  %1961 = vmatmul.mubr.msk.f32.vlgmr.msra.gmra.mxu0 %vm76_vm0, %v2349_v43 }
 0x2b0   :  { %1964 = vmatpush3.msra.mxu1 %v691_v50  ;;  %1971 = vmatpush3.msra.mxu0 %v765_v51 }
 0x2b1   :  { %1965 = vmatprep.subr.mxu1 %v2239_v20  ;;  %1972 = vmatprep.subr.mxu0 %v2239_v20 }
 0x2b2   :  { %1966 = vmatpush3.msra.mxu1 %v690_v52  ;;  %1973 = vmatpush3.msra.mxu0 %v764_v53 }
 0x2b3   :  { %1967 = vmatprep.mubr.msk.f32.mxu1 %vm2240_vm2, %v2239_v20  ;;  %1974 = vmatprep.mubr.msk.f32.mxu0 %vm2240_vm2, %v2239_v20 }
 0x2b4   :  { %1977 = vmatprep.subr.mxu1 %v2239_v20  ;;  %1984 = vmatprep.subr.mxu0 %v2239_v20 }
 0x2b5   :  { %1968 = vmatmul.mubr.msk.f32.vlgmr.msra.gmra.mxu1 %vm76_vm0, %v2349_v43  ;;  %1975 = vmatmul.mubr.msk.f32.vlgmr.msra.gmra.mxu0 %vm76_vm0, %v2349_v43 }
 0x2b6   :  { %1978 = vmatpush3.msra.mxu1 %v839_v54  ;;  %1985 = vmatpush3.msra.mxu0 %v913_v55 }
 0x2b7   :  { %1979 = vmatprep.subr.mxu1 %v2239_v20  ;;  %1986 = vmatprep.subr.mxu0 %v2239_v20 }
 0x2b8   :  { %1980 = vmatpush3.msra.mxu1 %v838_v56  ;;  %1987 = vmatpush3.msra.mxu0 %v912_v57 }
 0x2b9   :  { %1981 = vmatprep.mubr.msk.f32.mxu1 %vm2240_vm2, %v2239_v20  ;;  %1988 = vmatprep.mubr.msk.f32.mxu0 %vm2240_vm2, %v2239_v20 }
 0x2ba   :  { %1991 = vmatprep.subr.mxu1 %v2239_v20  ;;  %1998 = vmatprep.subr.mxu0 %v2239_v20 }
 0x2bb   :  { %1982 = vmatmul.mubr.msk.f32.vlgmr.msra.gmra.mxu1 %vm76_vm0, %v2349_v43  ;;  %1989 = vmatmul.mubr.msk.f32.vlgmr.msra.gmra.mxu0 %vm76_vm0, %v2349_v43 }
 0x2bc   :  { %1992 = vmatpush3.msra.mxu1 %v987_v58  ;;  %1999 = vmatpush3.msra.mxu0 %v1061_v59 }
 0x2bd   :  { %1993 = vmatprep.subr.mxu1 %v2239_v20  ;;  %2000 = vmatprep.subr.mxu0 %v2239_v20 }
 0x2be   :  { %1994 = vmatpush3.msra.mxu1 %v986_v60  ;;  %2001 = vmatpush3.msra.mxu0 %v1060_v61 }
 0x2bf   :  { %1995 = vmatprep.mubr.msk.f32.mxu1 %vm2240_vm2, %v2239_v20  ;;  %2002 = vmatprep.mubr.msk.f32.mxu0 %vm2240_vm2, %v2239_v20 }
 0x2c0   :  { %2005 = vmatprep.subr.mxu1 %v2239_v20  ;;  %2012 = vmatprep.subr.mxu0 %v2239_v20 }
 0x2c1   :  { %1996 = vmatmul.mubr.msk.f32.vlgmr.msra.gmra.mxu1 %vm76_vm0, %v2349_v43  ;;  %2003 = vmatmul.mubr.msk.f32.vlgmr.msra.gmra.mxu0 %vm76_vm0, %v2349_v43 }
 0x2c2   :  { %2006 = vmatpush3.msra.mxu1 %v1135_v62  ;;  %2013 = vmatpush3.msra.mxu0 %v1209_v63 }
 0x2c3   :  { %2007 = vmatprep.subr.mxu1 %v2239_v20  ;;  %2014 = vmatprep.subr.mxu0 %v2239_v20 }
 0x2c4   :  { %2008 = vmatpush3.msra.mxu1 %v1134_v0  ;;  %2015 = vmatpush3.msra.mxu0 %v1208_v1  ;;  %v195_v2 = vpop.xlane.xlu1 %194 }
 0x2c5   :  { %2009 = vmatprep.mubr.msk.f32.mxu1 %vm2240_vm2, %v2239_v20  ;;  %2016 = vmatprep.mubr.msk.f32.mxu0 %vm2240_vm2, %v2239_v20 }
 0x2c6   :  { %2019 = vmatprep.subr.mxu1 %v2239_v20  ;;  %2026 = vmatprep.subr.mxu0 %v2239_v20 }
 0x2c7   :  { %2010 = vmatmul.mubr.msk.f32.vlgmr.msra.gmra.mxu1 %vm76_vm0, %v2349_v43  ;;  %2017 = vmatmul.mubr.msk.f32.vlgmr.msra.gmra.mxu0 %vm76_vm0, %v2349_v43 }
 0x2c8   :  { %2020 = vmatpush3.msra.mxu1 %v1283_v3  ;;  %2027 = vmatpush3.msra.mxu0 %v1357_v4  ;;  %v198_v7 = vpop.xlane.xlu1 %197 }
 0x2c9   :  { %2021 = vmatprep.subr.mxu1 %v2239_v20  ;;  %2028 = vmatprep.subr.mxu0 %v2239_v20  ;;  %v199_v8 = vadd.f32 %v198_v7, %v195_v2 }
 0x2ca   :  { %2022 = vmatpush3.msra.mxu1 %v1282_v5  ;;  %2029 = vmatpush3.msra.mxu0 %v1356_v6 }
 0x2cb   :  { %2023 = vmatprep.mubr.msk.f32.mxu1 %vm2240_vm2, %v2239_v20  ;;  %2030 = vmatprep.mubr.msk.f32.mxu0 %vm2240_vm2, %v2239_v20  ;;  %v200_v9 = vrot.slane %v199_v8, 4  ;;  %v1438_v20 = vld [vmem:[#allocation6 + $0x8] sm:$0xff] }
 0x2cc   :  { %2024 = vmatmul.mubr.msk.f32.vlgmr.msra.gmra.mxu1 %vm76_vm0, %v2349_v43  ;;  %2031 = vmatmul.mubr.msk.f32.vlgmr.msra.gmra.mxu0 %vm76_vm0, %v2349_v43 }
 0x2cd   :  { %v201_v10 = vadd.f32 %v200_v9, %v199_v8  ;;  %2033 = vmatprep.subr.mxu1 %v1440_v16  ;;  %2053 = vmatprep.subr.mxu0 %v1581_v17 }
 0x2ce   :  { %2034 = vmatpush3.msra.mxu1 %v1440_v16  ;;  %2054 = vmatpush3.msra.mxu0 %v1581_v17 }
 0x2cf   :  { %v202_v11 = vrot.slane %v201_v10, 2  ;;  %2035 = vmatprep.subr.mxu1 %v1439_v18  ;;  %2055 = vmatprep.subr.mxu0 %v1580_v19 }
 0x2d0   :  { %2036 = vmatpush3.msra.mxu1 %v1439_v18  ;;  %2056 = vmatpush3.msra.mxu0 %v1580_v19 }
 0x2d1   :  { %v203_v12 = vadd.f32 %v202_v11, %v201_v10  ;;  %2037 = vmatprep.subr.mxu1 %v1438_v20  ;;  %2057 = vmatprep.subr.mxu0 %v1579_v21 }
 0x2d2   :  { %2038 = vmatpush3.msra.mxu1 %v1438_v20  ;;  %2058 = vmatpush3.msra.mxu0 %v1579_v21 }
 0x2d3   :  { %v204_v13 = vrot.slane %v203_v12, 1  ;;  %2039 = vmatprep.subr.mxu1 %v1437_v22  ;;  %2059 = vmatprep.subr.mxu0 %v1578_v23 }
 0x2d4   :  { %2040 = vmatpush3.msra.mxu1 %v1437_v22  ;;  %2060 = vmatpush3.msra.mxu0 %v1578_v23 }
 0x2d5   :  { %v205_v14 = vadd.f32 %v204_v13, %v203_v12 }
 0x2d7   :  { %v207_v15 = vmul.f32 0.0625, %v205_v14 }
 0x2d9   :  { %209 = vst.msk [vmem:[#allocation10] sm:$0x1] %vm208_vm3, %v207_v15 }
 0x363   :  { %v313_v24 = vpop.f32.mrf.mxu1  ;;  %v388_v25 = vpop.f32.mrf.mxu0 }
 0x364   :  { %318 = vst.msk [vmem:[#allocation2] sm:$0xf] %vm317_vm4, %v313_v24  ;;  %392 = vst.msk [vmem:[#allocation2 + $0x4] sm:$0xf] %vm317_vm4, %v388_v25 }
 0x365   :  { %v1927_v26 = vpop.f32.mrf.mxu1  ;;  %v1934_v27 = vpop.f32.mrf.mxu0 }
 0x369   :  { %v462_v28 = vpop.f32.mrf.mxu1  ;;  %v536_v29 = vpop.f32.mrf.mxu0 }
 0x36a   :  { %466 = vst.msk [vmem:[#allocation2 + $0x8] sm:$0xf] %vm317_vm4, %v462_v28  ;;  %540 = vst.msk [vmem:[#allocation2 + $0xc] sm:$0xf] %vm317_vm4, %v536_v29 }
 0x36b   :  { %v1941_v30 = vpop.f32.mrf.mxu1  ;;  %v1948_v31 = vpop.f32.mrf.mxu0  ;;  %v1429_v32 = vld [vmem:[#allocation2] sm:$0xff] }
 0x36c   :  { %2041 = vmatprep.mubr.msk.f32.mxu1 %vm1448_vm5, %v1429_v32  ;;  %2061 = vmatprep.mubr.msk.f32.mxu0 %vm1448_vm5, %v1429_v32 }
 0x36f   :  { %v610_v33 = vpop.f32.mrf.mxu1  ;;  %v684_v34 = vpop.f32.mrf.mxu0 }
 0x370   :  { %614 = vst.msk [vmem:[#allocation2 + $0x10] sm:$0xf] %vm317_vm4, %v610_v33  ;;  %688 = vst.msk [vmem:[#allocation2 + $0x14] sm:$0xf] %vm317_vm4, %v684_v34 }
 0x371   :  { %v1955_v35 = vpop.f32.mrf.mxu1  ;;  %v1962_v36 = vpop.f32.mrf.mxu0  ;;  %v1430_v37 = vld [vmem:[#allocation2 + $0x8] sm:$0xff] }
 0x372   :  { %2042 = vmatmul.mubr.msk.f32.vlgmr.msra.gmra.mxu1 %vm1448_vm5, %v1430_v37  ;;  %2062 = vmatmul.mubr.msk.f32.vlgmr.msra.gmra.mxu0 %vm1448_vm5, %v1430_v37 }
 0x375   :  { %v758_v38 = vpop.f32.mrf.mxu1  ;;  %v832_v39 = vpop.f32.mrf.mxu0 }
 0x376   :  { %762 = vst.msk [vmem:[#allocation2 + $0x18] sm:$0xf] %vm317_vm4, %v758_v38  ;;  %836 = vst.msk [vmem:[#allocation2 + $0x1c] sm:$0xf] %vm317_vm4, %v832_v39 }
 0x377   :  { %v1969_v40 = vpop.f32.mrf.mxu1  ;;  %v1976_v41 = vpop.f32.mrf.mxu0  ;;  %v1431_v42 = vld [vmem:[#allocation2 + $0x10] sm:$0xff] }
 0x378   :  { %2044 = vmatprep.mubr.msk.f32.mxu1 %vm1448_vm5, %v1431_v42  ;;  %2064 = vmatprep.mubr.msk.f32.mxu0 %vm1448_vm5, %v1431_v42 }
 0x37b   :  { %v906_v43 = vpop.f32.mrf.mxu1  ;;  %v980_v44 = vpop.f32.mrf.mxu0 }
 0x37c   :  { %910 = vst.msk [vmem:[#allocation2 + $0x20] sm:$0xf] %vm317_vm4, %v906_v43  ;;  %984 = vst.msk [vmem:[#allocation2 + $0x24] sm:$0xf] %vm317_vm4, %v980_v44 }
 0x37d   :  { %v1983_v45 = vpop.f32.mrf.mxu1  ;;  %v1990_v46 = vpop.f32.mrf.mxu0  ;;  %v1432_v47 = vld [vmem:[#allocation2 + $0x18] sm:$0xff] }
 0x37e   :  { %2045 = vmatmul.mubr.msk.f32.gmra.mxu1 %vm1448_vm5, %v1432_v47  ;;  %2065 = vmatmul.mubr.msk.f32.gmra.mxu0 %vm1448_vm5, %v1432_v47 }
 0x381   :  { %v1054_v48 = vpop.f32.mrf.mxu1  ;;  %v1128_v49 = vpop.f32.mrf.mxu0 }
 0x382   :  { %1058 = vst.msk [vmem:[#allocation2 + $0x28] sm:$0xf] %vm317_vm4, %v1054_v48  ;;  %1132 = vst.msk [vmem:[#allocation2 + $0x2c] sm:$0xf] %vm317_vm4, %v1128_v49 }
 0x383   :  { %v1997_v50 = vpop.f32.mrf.mxu1  ;;  %v2004_v51 = vpop.f32.mrf.mxu0  ;;  %v1433_v52 = vld [vmem:[#allocation2 + $0x20] sm:$0xff] }
 0x384   :  { %2047 = vmatprep.mubr.msk.f32.mxu1 %vm1448_vm5, %v1433_v52  ;;  %2067 = vmatprep.mubr.msk.f32.mxu0 %vm1448_vm5, %v1433_v52 }
 0x387   :  { %v1202_v53 = vpop.f32.mrf.mxu1  ;;  %v1276_v54 = vpop.f32.mrf.mxu0 }
 0x388   :  { %1206 = vst.msk [vmem:[#allocation2 + $0x30] sm:$0xf] %vm317_vm4, %v1202_v53  ;;  %1280 = vst.msk [vmem:[#allocation2 + $0x34] sm:$0xf] %vm317_vm4, %v1276_v54 }
 0x389   :  { %v2011_v55 = vpop.f32.mrf.mxu1  ;;  %v2018_v56 = vpop.f32.mrf.mxu0  ;;  %v1434_v57 = vld [vmem:[#allocation2 + $0x28] sm:$0xff] }
 0x38a   :  { %2048 = vmatmul.mubr.msk.f32.gmra.mxu1 %vm1448_vm5, %v1434_v57  ;;  %2068 = vmatmul.mubr.msk.f32.gmra.mxu0 %vm1448_vm5, %v1434_v57 }
 0x38c   :  { %v1350_v58 = vpop.f32.mrf.mxu1  ;;  %v1424_v59 = vpop.f32.mrf.mxu0 }
 0x38d   :  { %1354 = vst.msk [vmem:[#allocation2 + $0x38] sm:$0xf] %vm317_vm4, %v1350_v58  ;;  %1428 = vst.msk [vmem:[#allocation2 + $0x3c] sm:$0xf] %vm317_vm4, %v1424_v59 }
 0x38e   :  { %v2025_v60 = vpop.f32.mrf.mxu1  ;;  %v2032_v61 = vpop.f32.mrf.mxu0 }
 0x38f   :  { %v1435_v62 = vld [vmem:[#allocation2 + $0x30] sm:$0xff] }
 0x390   :  { %2050 = vmatprep.mubr.msk.f32.mxu1 %vm1448_vm5, %v1435_v62  ;;  %2070 = vmatprep.mubr.msk.f32.mxu0 %vm1448_vm5, %v1435_v62 }
 0x394   :  { %v1436_v63 = vld [vmem:[#allocation2 + $0x38] sm:$0xff] }
 0x395   :  { %2051 = vmatmul.mubr.msk.f32.gmra.mxu1 %vm1448_vm5, %v1436_v63  ;;  %2071 = vmatmul.mubr.msk.f32.gmra.mxu0 %vm1448_vm5, %v1436_v63 }
 0x396   :  { %2197 = shalt.err (!%p2194_p5)
}
 0x397   :  { %1781 = dma.vmem_to_hbm [thread:$0]  %s1779_s12, 16, %s2511_s9, [#allocation11]   ;;  %v1821_v0 = vld [vmem:[%s2508_s6] ss:$0 sm:$0xff] }
 0x398   :  { %v2478_v25 = vld [vmem:[%s2506_s4] ss:$0 sm:$0xff]  ;;  %s2242_s4 = smov [#allocation9]  }
 0x399   :  { %s1763_s21 = sshll.u32 %s2242_s4, 4  ;;  %s1764_s21 = int_to_ptr.vmem [resolvable:$true] %s1763_s21 }
 0x39a   :  { %s2206_s22 = scalar_lea.vmem %s1764_s21, 1024  ;;  %p2211_p7 = scmp.lt.s32.totalorder %s1764_s21, %s1764_s21 }
 0x39b   :  { %p2207_p6 = scmp.ne.s32.totalorder %s1764_s21, %s2206_s22  ;;  %p2212_p8 = scmp.lt.s32.totalorder %s2206_s22, %s2206_s22 }
 0x39d   :  { %p2213_p9 = por %p2212_p8, %p2211_p7 }
 0x39f   :  { %p2214_p10 = pnand %p2213_p9, %p2207_p6 }
 0x432   :  { %v2063_v1 = vpop.f32.mrf.mxu0  ;;  %v2043_v22 = vpop.f32.mrf.mxu1 }
 0x433   :  { %v1661_v2 = vadd.f32 %v2063_v1, %v1821_v0  ;;  %v1545_v29 = vadd.f32 %v2043_v22, %v2478_v25 }
 0x434   :  { %v1655_v3 = vpop.f32.mrf.mxu0  ;;  %v1539_v28 = vpop.f32.mrf.mxu1 }
 0x435   :  { %v1831_v4 = vmul.f32 -1.442695, %v1661_v2  ;;  %v1656_v5 = vadd.f32 %v1821_v0, %v1655_v3  ;;  %v1540_v33 = vadd.f32 %v2478_v25, %v1539_v28 }
 0x437   :  { %2094 = vpow2.f32 %v1831_v4  ;;  %v1830_v6 = vmul.f32 -1.442695, %v1656_v5 }
 0x439   :  { %2096 = vpow2.f32 %v1830_v6 }
 0x43e   :  { %v2066_v7 = vpop.f32.mrf.mxu0  ;;  %v2046_v41 = vpop.f32.mrf.mxu1 }
 0x43f   :  { %v1671_v8 = vadd.f32 %v2066_v7, %v1821_v0  ;;  %v1555_v47 = vadd.f32 %v2046_v41, %v2478_v25 }
 0x440   :  { %v1665_v9 = vpop.f32.mrf.mxu0  ;;  %v1549_v46 = vpop.f32.mrf.mxu1 }
 0x441   :  { %v1833_v10 = vmul.f32 -1.442695, %v1671_v8  ;;  %v1666_v11 = vadd.f32 %v1821_v0, %v1665_v9  ;;  %v1550_v51 = vadd.f32 %v2478_v25, %v1549_v46 }
 0x443   :  { %2098 = vpow2.f32 %v1833_v10  ;;  %v1832_v12 = vmul.f32 -1.442695, %v1666_v11 }
 0x444   :  { %v2095_v13 = vpop.eup %2094 }
 0x445   :  { %v1719_v14 = vadd.f32 1.0, %v2095_v13  ;;  %2100 = vpow2.f32 %v1832_v12 }
 0x446   :  { %v2097_v15 = vpop.eup %2096 }
 0x447   :  { %2102 = vrcp.f32 %v1719_v14  ;;  %v1718_v16 = vadd.f32 1.0, %v2097_v15 }
 0x449   :  { %2104 = vrcp.f32 %v1718_v16 }
 0x44a   :  { %v2069_v17 = vpop.f32.mrf.mxu0  ;;  %v2049_v54 = vpop.f32.mrf.mxu1 }
 0x44b   :  { %v1681_v18 = vadd.f32 %v2069_v17, %v1821_v0  ;;  %v1565_v60 = vadd.f32 %v2049_v54, %v2478_v25 }
 0x44c   :  { %v1675_v19 = vpop.f32.mrf.mxu0  ;;  %v1559_v58 = vpop.f32.mrf.mxu1 }
 0x44d   :  { %v1835_v20 = vmul.f32 -1.442695, %v1681_v18  ;;  %v1676_v21 = vadd.f32 %v1821_v0, %v1675_v19  ;;  %v1560_v63 = vadd.f32 %v2478_v25, %v1559_v58 }
 0x44f   :  { %2106 = vpow2.f32 %v1835_v20  ;;  %v1834_v23 = vmul.f32 -1.442695, %v1676_v21 }
 0x450   :  { %v2099_v24 = vpop.eup %2098 }
 0x451   :  { %v1721_v26 = vadd.f32 1.0, %v2099_v24  ;;  %2108 = vpow2.f32 %v1834_v23 }
 0x452   :  { %v2101_v27 = vpop.eup %2100 }
 0x453   :  { %2110 = vrcp.f32 %v1721_v26  ;;  %v1720_v30 = vadd.f32 1.0, %v2101_v27 }
 0x454   :  { %v2103_v31 = vpop.eup %2102 }
 0x455   :  { %v1743_v32 = vmul.f32 %v2103_v31, %v1545_v29  ;;  %2112 = vrcp.f32 %v1720_v30  ;;  %v2072_v34 = vpop.f32.mrf.mxu0  ;;  %v2052_v2 = vpop.f32.mrf.mxu1 }
 0x456   :  { %v2105_v35 = vpop.eup %2104  ;;  %v1691_v36 = vadd.f32 %v2072_v34, %v1821_v0  ;;  %v1575_v4 = vadd.f32 %v2052_v2, %v2478_v25 }
 0x457   :  { %1751 = vst.msk [vmem:[#allocation9 + $0x8] sm:$0xff] %vm1448_vm5, %v1743_v32  ;;  %v1742_v37 = vmul.f32 %v2105_v35, %v1540_v33  ;;  %v1685_v38 = vpop.f32.mrf.mxu0  ;;  %v1569_v3 = vpop.f32.mrf.mxu1 }
 0x458   :  { %v1837_v39 = vmul.f32 -1.442695, %v1691_v36  ;;  %v1686_v40 = vadd.f32 %v1821_v0, %v1685_v38  ;;  %v1570_v7 = vadd.f32 %v2478_v25, %v1569_v3 }
 0x459   :  { %1750 = vst.msk [vmem:[#allocation9] sm:$0xff] %vm1448_vm5, %v1742_v37 }
 0x45a   :  { %2114 = vpow2.f32 %v1837_v39  ;;  %v1836_v42 = vmul.f32 -1.442695, %v1686_v40 }
 0x45c   :  { %v2107_v43 = vpop.eup %2106  ;;  %2116 = vpow2.f32 %v1836_v42 }
 0x45d   :  { %v1723_v44 = vadd.f32 1.0, %v2107_v43 }
 0x45e   :  { %v2109_v45 = vpop.eup %2108 }
 0x45f   :  { %2118 = vrcp.f32 %v1723_v44  ;;  %v1722_v48 = vadd.f32 1.0, %v2109_v45 }
 0x460   :  { %v2111_v49 = vpop.eup %2110 }
 0x461   :  { %v1745_v50 = vmul.f32 %v2111_v49, %v1555_v47  ;;  %2120 = vrcp.f32 %v1722_v48 }
 0x462   :  { %v2113_v52 = vpop.eup %2112 }
 0x463   :  { %1753 = vst.msk [vmem:[#allocation9 + $0x18] sm:$0xff] %vm1448_vm5, %v1745_v50  ;;  %v1744_v53 = vmul.f32 %v2113_v52, %v1550_v51 }
 0x465   :  { %1752 = vst.msk [vmem:[#allocation9 + $0x10] sm:$0xff] %vm1448_vm5, %v1744_v53 }
 0x467   :  { %v2115_v55 = vpop.eup %2114 }
 0x468   :  { %v1725_v56 = vadd.f32 1.0, %v2115_v55 }
 0x469   :  { %v2117_v57 = vpop.eup %2116 }
 0x46a   :  { %2122 = vrcp.f32 %v1725_v56  ;;  %v1724_v59 = vadd.f32 1.0, %v2117_v57 }
 0x46c   :  { %v2119_v61 = vpop.eup %2118  ;;  %2124 = vrcp.f32 %v1724_v59 }
 0x46d   :  { %v1747_v62 = vmul.f32 %v2119_v61, %v1565_v60 }
 0x46e   :  { %v2121_v0 = vpop.eup %2120 }
 0x46f   :  { %1755 = vst.msk [vmem:[#allocation9 + $0x28] sm:$0xff] %vm1448_vm5, %v1747_v62  ;;  %v1746_v1 = vmul.f32 %v2121_v0, %v1560_v63 }
 0x471   :  { %1754 = vst.msk [vmem:[#allocation9 + $0x20] sm:$0xff] %vm1448_vm5, %v1746_v1 }
 0x477   :  { %v2123_v5 = vpop.eup %2122 }
 0x478   :  { %v1749_v6 = vmul.f32 %v2123_v5, %v1575_v4 }
 0x479   :  { %v2125_v8 = vpop.eup %2124 }
 0x47a   :  { %1757 = vst.msk [vmem:[#allocation9 + $0x38] sm:$0xff] %vm1448_vm5, %v1749_v6  ;;  %v1748_v9 = vmul.f32 %v2125_v8, %v1570_v7 }
 0x47c   :  { %1756 = vst.msk [vmem:[#allocation9 + $0x30] sm:$0xff] %vm1448_vm5, %v1748_v9 }
 0x47d   :  { %2217 = shalt.err (!%p2214_p10)
}
 0x47e   :  { %1769 = dma.vmem_to_hbm [thread:$0]  %s1764_s21, 1024, %s2509_s7, [#allocation5], %s2236_s14, %s2236_s14, %s2237_s15  }
 0x47f   :  { %2230 = dma.done.wait [#allocation5], 1024  }
 0x480   :  { %2231 = vsyncadd [#allocation5], 4294966272 }
 0x481   :  { %2232 = dma.done.wait [#allocation11], 16  }
 0x482   :  { %2233 = vsyncadd [#allocation11], 4294967280 }
 0x483   :  { %1790 = vsyncpa [#allocation4], 1 }
 0x484   :  { %1791 = vsyncpa [#allocation7], 1 }
 0x485   :  { %1792 = vsyncpa [#allocation5], 1 }
 0x486   :  { %1793 = vsyncpa [#allocation11], 1 }

</bundles_post_ra>
